<compile_context>
chip_gen: v7x
topology: tpu7x:2x2x1
jax: 0.10.0
libtpu: 0.0.40
codegen_flags: <defaults>
</compile_context>

<pallas_src>
import jax
import jax.numpy as jnp
from jax.experimental import pallas as pl
from jax.experimental.pallas import tpu as pltpu


def _round_up(x, m):
    return ((x + m - 1) // m) * m


def mlp_kernel(x_ref, w1_ref, b1_ref, w2_ref, b2_ref,
               w3_ref, b3_ref, w4_ref, b4_ref, out_ref):
    """Fused MLP forward: 4 MXU matmuls (bf16 operands, f32 accumulation),
    bias adds in f32, ReLU x3, bf16 lane-dense store."""
    # Activation tile arrives in native f32; cast to bf16 on-chip (VPU) just
    # before the MXU — no separate cast/pad pass over x in HBM.
    x = x_ref[...].astype(jnp.bfloat16)

    # input layer: Linear + ReLU
    h = jnp.dot(x, w1_ref[...], preferred_element_type=jnp.float32) + b1_ref[...]
    h = jnp.maximum(h, 0.0).astype(jnp.bfloat16)

    # hidden layer 1: Linear + ReLU
    h = jnp.dot(h, w2_ref[...], preferred_element_type=jnp.float32) + b2_ref[...]
    h = jnp.maximum(h, 0.0).astype(jnp.bfloat16)

    # hidden layer 2: Linear + ReLU
    h = jnp.dot(h, w3_ref[...], preferred_element_type=jnp.float32) + b3_ref[...]
    h = jnp.maximum(h, 0.0).astype(jnp.bfloat16)

    # output layer: Linear, no activation
    y = jnp.dot(h, w4_ref[...], preferred_element_type=jnp.float32) + b4_ref[...]
    out_ref[...] = y.astype(out_ref.dtype)


def pack_params(params):
    """One-time packing (call outside the per-step path): pad hidden/class
    dims up to 128 lanes, zero-pad the dead rows/cols, cast MXU operands
    (weights) to bf16; biases stay f32 (added after f32 accumulation).
    Zero pad + ReLU keeps the padded lanes at exactly 0."""
    K = params["w1"].shape[0]
    Hp = _round_up(params["w1"].shape[1], 128)   # hidden 50 -> 128
    Np = _round_up(params["w4"].shape[1], 128)   # classes 10 -> 128

    def pad2(a, r, c):
        return jnp.pad(a, ((0, r - a.shape[0]), (0, c - a.shape[1])))

    return dict(
        w1=pad2(params["w1"], K, Hp).astype(jnp.bfloat16),
        b1=pad2(params["b1"], 1, Hp).astype(jnp.float32),
        w2=pad2(params["w2"], Hp, Hp).astype(jnp.bfloat16),
        b2=pad2(params["b2"], 1, Hp).astype(jnp.float32),
        w3=pad2(params["w3"], Hp, Hp).astype(jnp.bfloat16),
        b3=pad2(params["b3"], 1, Hp).astype(jnp.float32),
        w4=pad2(params["w4"], Hp, Np).astype(jnp.bfloat16),
        b4=pad2(params["b4"], 1, Np).astype(jnp.float32),
    )


def mlp_forward(x_nchw, packed, *, num_classes=10, tm_max=512):
    """x_nchw: (B, C, H, W) float32. packed: output of pack_params().
    Returns (B, num_classes) float32 logits."""
    B = x_nchw.shape[0]
    x2d = x_nchw.reshape(B, -1)              # torch.flatten(x, 1); free (contiguous)
    K = x2d.shape[1]
    Hp = packed["w1"].shape[1]
    Np = packed["w4"].shape[1]
    assert packed["w1"].shape[0] == K, "packed w1 does not match flattened input"

    # VMEM guard: keep the double-buffered f32 x tile under ~16 MiB
    # (well inside v7x's 64 MiB / v5e-v6e's 128 MiB).
    tm_cap = max(8, ((16 << 20) // (8 * K)) // 8 * 8)
    tm_max = min(tm_max, tm_cap)

    # Batch tiling.  Tiny batches: pad rows to the 8-sublane boundary (a few
    # KiB at most) and run a single tile.  Otherwise no padding at all: block
    # rows are a multiple of 8 and Pallas handles the partial last block; aim
    # for >= 2 grid steps so v7x can shard the "parallel" axis across both TCs.
    if B < 16:
        Bp = _round_up(B, 8)
        if Bp != B:
            x2d = jnp.pad(x2d, ((0, Bp - B), (0, 0)))
        TM = min(Bp, tm_max)
    else:
        Bp = B
        TM = min(_round_up(pl.cdiv(Bp, 2), 8), tm_max)
    grid = (pl.cdiv(Bp, TM),)

    out = pl.pallas_call(
        mlp_kernel,
        out_shape=jax.ShapeDtypeStruct((Bp, Np), jnp.bfloat16),
        grid=grid,
        in_specs=[
            pl.BlockSpec((TM, K), lambda i: (i, 0)),    # x streams over batch (f32)
            pl.BlockSpec((K, Hp), lambda i: (0, 0)),    # weights/biases resident
            pl.BlockSpec((1, Hp), lambda i: (0, 0)),
            pl.BlockSpec((Hp, Hp), lambda i: (0, 0)),
            pl.BlockSpec((1, Hp), lambda i: (0, 0)),
            pl.BlockSpec((Hp, Hp), lambda i: (0, 0)),
            pl.BlockSpec((1, Hp), lambda i: (0, 0)),
            pl.BlockSpec((Hp, Np), lambda i: (0, 0)),
            pl.BlockSpec((1, Np), lambda i: (0, 0)),
        ],
        out_specs=pl.BlockSpec((TM, Np), lambda i: (i, 0)),
        compiler_params=pltpu.CompilerParams(
            dimension_semantics=("parallel",)),
    )(x2d, packed["w1"], packed["b1"], packed["w2"], packed["b2"],
      packed["w3"], packed["b3"], packed["w4"], packed["b4"])

    # Drop padded batch rows and the all-zero padded class lanes; upcast.
    return out[:B, :num_classes].astype(jnp.float32)


def init_params(key, in_features, num_hidden=50, num_classes=10):
    """PyTorch-style Linear init: U(-1/sqrt(fan_in), 1/sqrt(fan_in)).
    Weights stored as (in, out), biases as (1, out)."""
    def linear(k, fan_in, fan_out):
        kw, kb = jax.random.split(k)
        bound = 1.0 / (fan_in ** 0.5)
        w = jax.random.uniform(kw, (fan_in, fan_out), jnp.float32, -bound, bound)
        b = jax.random.uniform(kb, (1, fan_out), jnp.float32, -bound, bound)
        return w, b

    k1, k2, k3, k4 = jax.random.split(key, 4)
    w1, b1 = linear(k1, in_features, num_hidden)
    w2, b2 = linear(k2, num_hidden, num_hidden)
    w3, b3 = linear(k3, num_hidden, num_hidden)
    w4, b4 = linear(k4, num_hidden, num_classes)
    return dict(w1=w1, b1=b1, w2=w2, b2=b2, w3=w3, b3=b3, w4=w4, b4=b4)


def mlp_reference(x_nchw, params):
    """Pure-JAX reference using the same bf16-quantized operands as the kernel
    (f32 math), so the comparison isolates kernel correctness from the
    intended bf16 quantization of the MXU operands."""
    x = x_nchw.reshape(x_nchw.shape[0], -1).astype(jnp.bfloat16).astype(jnp.float32)
    q = lambda a: a.astype(jnp.bfloat16).astype(jnp.float32)
    h = jnp.maximum(x @ q(params["w1"]) + params["b1"], 0.0)
    h = q(h)
    h = jnp.maximum(h @ q(params["w2"]) + params["b2"], 0.0)
    h = q(h)
    h = jnp.maximum(h @ q(params["w3"]) + params["b3"], 0.0)
    h = q(h)
    return h @ q(params["w4"]) + params["b4"]


if __name__ == "__main__":
    key = jax.random.PRNGKey(0)
    kx, kp = jax.random.split(key)

    B, C, H, W = 2, 4, 16, 16
    num_hidden, num_classes = 50, 10

    x = jax.random.normal(kx, (B, C, H, W), dtype=jnp.float32)
    params = init_params(kp, C * H * W, num_hidden, num_classes)

    # Pack (pad + bf16-cast) weights ONCE, outside the per-call path.
    packed = pack_params(params)
    packed = jax.block_until_ready(packed)

    out = mlp_forward(x, packed, num_classes=num_classes)
    out = jax.block_until_ready(out)

    ref = mlp_reference(x, params)
    assert out.shape == (B, num_classes), out.shape
    assert jnp.allclose(out, ref, atol=2e-2, rtol=2e-2), "mismatch vs reference"

    print("KERNEL_OK")
</pallas_src>

<mosaic_0001>
module attributes {stable_mosaic.version = 11 : i64} {
  func.func @mlp_kernel(%arg0: i32, %arg1: memref<8x1024xf32, #tpu.memory_space<vmem>>, %arg2: memref<1024x128xbf16, #tpu.memory_space<vmem>>, %arg3: memref<1x128xf32, #tpu.memory_space<vmem>>, %arg4: memref<128x128xbf16, #tpu.memory_space<vmem>>, %arg5: memref<1x128xf32, #tpu.memory_space<vmem>>, %arg6: memref<128x128xbf16, #tpu.memory_space<vmem>>, %arg7: memref<1x128xf32, #tpu.memory_space<vmem>>, %arg8: memref<128x128xbf16, #tpu.memory_space<vmem>>, %arg9: memref<1x128xf32, #tpu.memory_space<vmem>>, %arg10: memref<8x128xbf16, #tpu.memory_space<vmem>>) attributes {dimension_semantics = [#tpu.dimension_semantics<parallel>], iteration_bounds = array<i64: 1>, scalar_prefetch = 0 : i64, scratch_operands = 0 : i64, tpu.core_type = #tpu.core_type<tc>, window_params = [{transform_indices = @transform_0, window_bounds = array<i64: 8, 1024>}, {pipeline_mode = #tpu.pipeline_mode<synchronous>, transform_indices = @transform_1, window_bounds = array<i64: 1024, 128>}, {pipeline_mode = #tpu.pipeline_mode<synchronous>, transform_indices = @transform_2, window_bounds = array<i64: 1, 128>}, {pipeline_mode = #tpu.pipeline_mode<synchronous>, transform_indices = @transform_3, window_bounds = array<i64: 128, 128>}, {pipeline_mode = #tpu.pipeline_mode<synchronous>, transform_indices = @transform_4, window_bounds = array<i64: 1, 128>}, {pipeline_mode = #tpu.pipeline_mode<synchronous>, transform_indices = @transform_5, window_bounds = array<i64: 128, 128>}, {pipeline_mode = #tpu.pipeline_mode<synchronous>, transform_indices = @transform_6, window_bounds = array<i64: 1, 128>}, {pipeline_mode = #tpu.pipeline_mode<synchronous>, transform_indices = @transform_7, window_bounds = array<i64: 128, 128>}, {pipeline_mode = #tpu.pipeline_mode<synchronous>, transform_indices = @transform_8, window_bounds = array<i64: 1, 128>}, {transform_indices = @transform_9, window_bounds = array<i64: 8, 128>}]} {
    %c0 = arith.constant 0 : index
    %c0_0 = arith.constant 0 : index
    %0 = vector.load %arg1[%c0, %c0_0] : memref<8x1024xf32, #tpu.memory_space<vmem>>, vector<8x1024xf32>
    %1 = arith.truncf %0 : vector<8x1024xf32> to vector<8x1024xbf16>
    %c0_1 = arith.constant 0 : index
    %c0_2 = arith.constant 0 : index
    %2 = vector.load %arg2[%c0_1, %c0_2] : memref<1024x128xbf16, #tpu.memory_space<vmem>>, vector<1024x128xbf16>
    %cst = arith.constant dense<0.000000e+00> : vector<8x128xf32>
    %3 = tpu.matmul %1, %2, %cst {dimension_numbers = #tpu.dot_dimension_numbers<[1], [0], [0], [1], [0, 0, 1, 1], [], []>} : vector<8x1024xbf16>, vector<1024x128xbf16>, vector<8x128xf32> -> vector<8x128xf32>
    %c0_3 = arith.constant 0 : index
    %c0_4 = arith.constant 0 : index
    %4 = vector.load %arg3[%c0_3, %c0_4] : memref<1x128xf32, #tpu.memory_space<vmem>>, vector<1x128xf32>
    %5 = vector.broadcast %4 : vector<1x128xf32> to vector<8x128xf32>
    %6 = arith.addf %3, %5 : vector<8x128xf32>
    %cst_5 = arith.constant 0.000000e+00 : f32
    %7 = vector.broadcast %cst_5 : f32 to vector<8x128xf32>
    %8 = arith.maximumf %6, %7 : vector<8x128xf32>
    %9 = arith.truncf %8 : vector<8x128xf32> to vector<8x128xbf16>
    %c0_6 = arith.constant 0 : index
    %c0_7 = arith.constant 0 : index
    %10 = vector.load %arg4[%c0_6, %c0_7] : memref<128x128xbf16, #tpu.memory_space<vmem>>, vector<128x128xbf16>
    %cst_8 = arith.constant dense<0.000000e+00> : vector<8x128xf32>
    %11 = tpu.matmul %9, %10, %cst_8 {dimension_numbers = #tpu.dot_dimension_numbers<[1], [0], [0], [1], [0, 0, 1, 1], [], []>} : vector<8x128xbf16>, vector<128x128xbf16>, vector<8x128xf32> -> vector<8x128xf32>
    %c0_9 = arith.constant 0 : index
    %c0_10 = arith.constant 0 : index
    %12 = vector.load %arg5[%c0_9, %c0_10] : memref<1x128xf32, #tpu.memory_space<vmem>>, vector<1x128xf32>
    %13 = vector.broadcast %12 : vector<1x128xf32> to vector<8x128xf32>
    %14 = arith.addf %11, %13 : vector<8x128xf32>
    %cst_11 = arith.constant 0.000000e+00 : f32
    %15 = vector.broadcast %cst_11 : f32 to vector<8x128xf32>
    %16 = arith.maximumf %14, %15 : vector<8x128xf32>
    %17 = arith.truncf %16 : vector<8x128xf32> to vector<8x128xbf16>
    %c0_12 = arith.constant 0 : index
    %c0_13 = arith.constant 0 : index
    %18 = vector.load %arg6[%c0_12, %c0_13] : memref<128x128xbf16, #tpu.memory_space<vmem>>, vector<128x128xbf16>
    %cst_14 = arith.constant dense<0.000000e+00> : vector<8x128xf32>
    %19 = tpu.matmul %17, %18, %cst_14 {dimension_numbers = #tpu.dot_dimension_numbers<[1], [0], [0], [1], [0, 0, 1, 1], [], []>} : vector<8x128xbf16>, vector<128x128xbf16>, vector<8x128xf32> -> vector<8x128xf32>
    %c0_15 = arith.constant 0 : index
    %c0_16 = arith.constant 0 : index
    %20 = vector.load %arg7[%c0_15, %c0_16] : memref<1x128xf32, #tpu.memory_space<vmem>>, vector<1x128xf32>
    %21 = vector.broadcast %20 : vector<1x128xf32> to vector<8x128xf32>
    %22 = arith.addf %19, %21 : vector<8x128xf32>
    %cst_17 = arith.constant 0.000000e+00 : f32
    %23 = vector.broadcast %cst_17 : f32 to vector<8x128xf32>
    %24 = arith.maximumf %22, %23 : vector<8x128xf32>
    %25 = arith.truncf %24 : vector<8x128xf32> to vector<8x128xbf16>
    %c0_18 = arith.constant 0 : index
    %c0_19 = arith.constant 0 : index
    %26 = vector.load %arg8[%c0_18, %c0_19] : memref<128x128xbf16, #tpu.memory_space<vmem>>, vector<128x128xbf16>
    %cst_20 = arith.constant dense<0.000000e+00> : vector<8x128xf32>
    %27 = tpu.matmul %25, %26, %cst_20 {dimension_numbers = #tpu.dot_dimension_numbers<[1], [0], [0], [1], [0, 0, 1, 1], [], []>} : vector<8x128xbf16>, vector<128x128xbf16>, vector<8x128xf32> -> vector<8x128xf32>
    %c0_21 = arith.constant 0 : index
    %c0_22 = arith.constant 0 : index
    %28 = vector.load %arg9[%c0_21, %c0_22] : memref<1x128xf32, #tpu.memory_space<vmem>>, vector<1x128xf32>
    %29 = vector.broadcast %28 : vector<1x128xf32> to vector<8x128xf32>
    %30 = arith.addf %27, %29 : vector<8x128xf32>
    %31 = arith.truncf %30 : vector<8x128xf32> to vector<8x128xbf16>
    %c0_23 = arith.constant 0 : index
    %c0_24 = arith.constant 0 : index
    %32 = vector.load %arg10[%c0_23, %c0_24] : memref<8x128xbf16, #tpu.memory_space<vmem>>, vector<8x128xbf16>
    tpu.vector_store %arg10[%c0_23, %c0_24], %31 {strides = array<i32>} : memref<8x128xbf16, #tpu.memory_space<vmem>>, vector<8x128xbf16>,
    return
  }
  func.func @transform_0(%arg0: i32) -> (i32, i32) {
    %c0_i32 = arith.constant 0 : i32
    %c0_i32_0 = arith.constant 0 : i32
    return %arg0, %c0_i32 : i32, i32
  }
  func.func @transform_1(%arg0: i32) -> (i32, i32) {
    %c0_i32 = arith.constant 0 : i32
    %c0_i32_0 = arith.constant 0 : i32
    %c0_i32_1 = arith.constant 0 : i32
    return %c0_i32, %c0_i32_0 : i32, i32
  }
  func.func @transform_2(%arg0: i32) -> (i32, i32) {
    %c0_i32 = arith.constant 0 : i32
    %c0_i32_0 = arith.constant 0 : i32
    %c0_i32_1 = arith.constant 0 : i32
    return %c0_i32, %c0_i32_0 : i32, i32
  }
  func.func @transform_3(%arg0: i32) -> (i32, i32) {
    %c0_i32 = arith.constant 0 : i32
    %c0_i32_0 = arith.constant 0 : i32
    %c0_i32_1 = arith.constant 0 : i32
    return %c0_i32, %c0_i32_0 : i32, i32
  }
  func.func @transform_4(%arg0: i32) -> (i32, i32) {
    %c0_i32 = arith.constant 0 : i32
    %c0_i32_0 = arith.constant 0 : i32
    %c0_i32_1 = arith.constant 0 : i32
    return %c0_i32, %c0_i32_0 : i32, i32
  }
  func.func @transform_5(%arg0: i32) -> (i32, i32) {
    %c0_i32 = arith.constant 0 : i32
    %c0_i32_0 = arith.constant 0 : i32
    %c0_i32_1 = arith.constant 0 : i32
    return %c0_i32, %c0_i32_0 : i32, i32
  }
  func.func @transform_6(%arg0: i32) -> (i32, i32) {
    %c0_i32 = arith.constant 0 : i32
    %c0_i32_0 = arith.constant 0 : i32
    %c0_i32_1 = arith.constant 0 : i32
    return %c0_i32, %c0_i32_0 : i32, i32
  }
  func.func @transform_7(%arg0: i32) -> (i32, i32) {
    %c0_i32 = arith.constant 0 : i32
    %c0_i32_0 = arith.constant 0 : i32
    %c0_i32_1 = arith.constant 0 : i32
    return %c0_i32, %c0_i32_0 : i32, i32
  }
  func.func @transform_8(%arg0: i32) -> (i32, i32) {
    %c0_i32 = arith.constant 0 : i32
    %c0_i32_0 = arith.constant 0 : i32
    %c0_i32_1 = arith.constant 0 : i32
    return %c0_i32, %c0_i32_0 : i32, i32
  }
  func.func @transform_9(%arg0: i32) -> (i32, i32) {
    %c0_i32 = arith.constant 0 : i32
    %c0_i32_0 = arith.constant 0 : i32
    return %arg0, %c0_i32 : i32, i32
  }
}

</mosaic_0001>

<bundles_post_ra>
// kernel: tpu_custom_call.1
= control target key start
LH: loop header
LB: loop body
LE: loop exit
PB: predicated region body
PF: predicated region fallthrough
CT: control target
= control target key end

     0   :  { %14 = vsyncpa [#allocation3], 0  ;;  %s1844_s0 = inlined_call_operand.hbm [shape: f32[8,1024], index: 0, kind: input, shape index: {}]   ;;  %s1845_s1 = inlined_call_operand.hbm [shape: bf16[1024,128], index: 1, kind: input, shape index: {}]   ;;  %s1846_s2 = inlined_call_operand.vmem [shape: f32[1,128], index: 2, kind: input, shape index: {}]   ;;  %s1847_s3 = inlined_call_operand.hbm [shape: bf16[128,128], index: 3, kind: input, shape index: {}]   ;;  %s1848_s4 = inlined_call_operand.vmem [shape: f32[1,128], index: 4, kind: input, shape index: {}]   ;;  %s1849_s5 = inlined_call_operand.hbm [shape: bf16[128,128], index: 5, kind: input, shape index: {}]   ;;  %s1850_s6 = inlined_call_operand.vmem [shape: f32[1,128], index: 6, kind: input, shape index: {}]   ;;  %s1851_s7 = inlined_call_operand.hbm [shape: bf16[128,128], index: 7, kind: input, shape index: {}]   ;;  %s1852_s8 = inlined_call_operand.vmem [shape: f32[1,128], index: 8, kind: input, shape index: {}]   ;;  %s1853_s9 = inlined_call_operand.hbm [shape: bf16[8,128], index: 9, kind: output, shape index: {}]  }
   0x1   :  { %15 = vsyncpa [#allocation6], 0 }
   0x2   :  { %16 = vsyncpa [#allocation9], 0 }
   0x3   :  { %17 = vsyncpa [#allocation4], 0  ;;  %s1658_s30 = smov [#allocation5]   ;;  %s1518_s13 = scalar_lea.hbm %s1845_s1, 8192 }
   0x4   :  { %s33_s10 = sshll.u32 %s1658_s30, 4  ;;  %p1519_p0 = scmp.ne.s32.totalorder %s1845_s1, %s1518_s13  ;;  %s34_s10 = int_to_ptr.vmem [resolvable:$true] %s33_s10 }
   0x5   :  { %p1522_p1 = scmp.lt.u32.totalorder %s1518_s13, %s1845_s1 }
   0x7   :  { %p1524_p2 = pnand %p1522_p1, %p1519_p0 }
   0x9   :  { %1527 = shalt.err (!%p1524_p2)
}
   0xa   :  { %s1528_s18 = scalar_lea.vmem %s34_s10, 8192  ;;  %p1533_p4 = scmp.lt.s32.totalorder %s34_s10, %s34_s10 }
   0xb   :  { %p1529_p3 = scmp.ne.s32.totalorder %s34_s10, %s1528_s18  ;;  %p1534_p5 = scmp.lt.s32.totalorder %s1528_s18, %s1528_s18 }
   0xd   :  { %p1535_p6 = por %p1534_p5, %p1533_p4 }
   0xf   :  { %p1536_p7 = pnand %p1535_p6, %p1529_p3 }
  0x11   :  { %1539 = shalt.err (!%p1536_p7)
}
  0x12   :  { %s1659_s19 = smov 64   ;;  %s1660_s20 = smov 4  }
  0x13   :  { %39 = dma.hbm_to_vmem [thread:$0]  %s1845_s1, 8192, %s34_s10, [#allocation6], %s1659_s19, %s1659_s19, %s1660_s20  }
  0x14   :  { %s1661_s23 = smov [#allocation8]   ;;  %s1662_s25 = smov [#allocation2]  }
  0x15   :  { %s61_s24 = sshll.u32 %s1661_s23, 4  ;;  %s24_s26 = sshll.u32 %s1662_s25, 4  ;;  %s62_s24 = int_to_ptr.vmem [resolvable:$true] %s61_s24  ;;  %s25_s26 = int_to_ptr.vmem [resolvable:$true] %s24_s26 }
  0x16   :  { %s1540_s29 = scalar_lea.hbm %s1849_s5, 1024 }
  0x17   :  { %p1541_p8 = scmp.ne.s32.totalorder %s1849_s5, %s1540_s29  ;;  %p1544_p9 = scmp.lt.u32.totalorder %s1540_s29, %s1849_s5 }
  0x19   :  { %p1546_p10 = pnand %p1544_p9, %p1541_p8 }
  0x1b   :  { %1549 = shalt.err (!%p1546_p10)
}
  0x1c   :  { %s1550_s1 = scalar_lea.vmem %s62_s24, 1024  ;;  %p1555_p12 = scmp.lt.s32.totalorder %s62_s24, %s62_s24 }
  0x1d   :  { %p1551_p11 = scmp.ne.s32.totalorder %s62_s24, %s1550_s1  ;;  %p1556_p13 = scmp.lt.s32.totalorder %s1550_s1, %s1550_s1 }
  0x1f   :  { %p1557_p0 = por %p1556_p13, %p1555_p12 }
  0x21   :  { %p1558_p1 = pnand %p1557_p0, %p1551_p11 }
  0x23   :  { %1561 = shalt.err (!%p1558_p1)
}
  0x24   :  { %67 = dma.hbm_to_vmem [thread:$0]  %s1849_s5, 1024, %s62_s24, [#allocation9], %s1659_s19, %s1659_s19, %s1660_s20  }
  0x25   :  { %s1562_s17 = scalar_lea.hbm %s1844_s0, 1024 }
  0x26   :  { %p1563_p2 = scmp.ne.s32.totalorder %s1844_s0, %s1562_s17  ;;  %p1566_p3 = scmp.lt.u32.totalorder %s1562_s17, %s1844_s0 }
  0x28   :  { %p1568_p4 = pnand %p1566_p3, %p1563_p2 }
  0x2a   :  { %1571 = shalt.err (!%p1568_p4)
}
  0x2b   :  { %s1572_s25 = scalar_lea.vmem %s25_s26, 1024  ;;  %p1577_p6 = scmp.lt.s32.totalorder %s25_s26, %s25_s26 }
  0x2c   :  { %p1573_p5 = scmp.ne.s32.totalorder %s25_s26, %s1572_s25  ;;  %p1578_p7 = scmp.lt.s32.totalorder %s1572_s25, %s1572_s25 }
  0x2e   :  { %p1579_p8 = por %p1578_p7, %p1577_p6 }
  0x30   :  { %p1580_p9 = pnand %p1579_p8, %p1573_p5 }
  0x32   :  { %1583 = shalt.err (!%p1580_p9)
}
  0x33   :  { %27 = dma.hbm_to_vmem [thread:$0]  %s1844_s0, 1024, %s25_s26, [#allocation3]  }
  0x34   :  { %s1663_s27 = smov [#allocation7]   ;;  %s1664_s29 = smov [#allocation10]  }
  0x35   :  { %s47_s28 = sshll.u32 %s1663_s27, 4  ;;  %s75_s30 = sshll.u32 %s1664_s29, 4  ;;  %s48_s28 = int_to_ptr.vmem [resolvable:$true] %s47_s28  ;;  %s76_s30 = int_to_ptr.vmem [resolvable:$true] %s75_s30 }
  0x36   :  { %s1584_s13 = scalar_lea.hbm %s1847_s3, 1024 }
  0x37   :  { %p1585_p10 = scmp.ne.s32.totalorder %s1847_s3, %s1584_s13  ;;  %p1588_p11 = scmp.lt.u32.totalorder %s1584_s13, %s1847_s3 }
  0x39   :  { %p1590_p12 = pnand %p1588_p11, %p1585_p10 }
  0x3b   :  { %1593 = shalt.err (!%p1590_p12)
}
  0x3c   :  { %s1594_s0 = scalar_lea.vmem %s48_s28, 1024  ;;  %p1599_p0 = scmp.lt.s32.totalorder %s48_s28, %s48_s28 }
  0x3d   :  { %p1595_p13 = scmp.ne.s32.totalorder %s48_s28, %s1594_s0  ;;  %p1600_p1 = scmp.lt.s32.totalorder %s1594_s0, %s1594_s0 }
  0x3f   :  { %p1601_p2 = por %p1600_p1, %p1599_p0 }
  0x41   :  { %p1602_p3 = pnand %p1601_p2, %p1595_p13 }
  0x43   :  { %1605 = shalt.err (!%p1602_p3)
}
  0x44   :  { %53 = dma.hbm_to_vmem [thread:$0]  %s1847_s3, 1024, %s48_s28, [#allocation6], %s1659_s19, %s1659_s19, %s1660_s20  }
  0x45   :  { %s1606_s21 = scalar_lea.hbm %s1851_s7, 1024 }
  0x46   :  { %p1607_p4 = scmp.ne.s32.totalorder %s1851_s7, %s1606_s21  ;;  %p1610_p5 = scmp.lt.u32.totalorder %s1606_s21, %s1851_s7 }
  0x48   :  { %p1612_p6 = pnand %p1610_p5, %p1607_p4 }
  0x4a   :  { %1615 = shalt.err (!%p1612_p6)
}
  0x4b   :  { %s1616_s24 = scalar_lea.vmem %s76_s30, 1024  ;;  %p1621_p8 = scmp.lt.s32.totalorder %s76_s30, %s76_s30 }
  0x4c   :  { %p1617_p7 = scmp.ne.s32.totalorder %s76_s30, %s1616_s24  ;;  %p1622_p9 = scmp.lt.s32.totalorder %s1616_s24, %s1616_s24 }
  0x4e   :  { %p1623_p10 = por %p1622_p9, %p1621_p8 }
  0x50   :  { %p1624_p11 = pnand %p1623_p10, %p1617_p7 }
  0x52   :  { %1627 = shalt.err (!%p1624_p11)
}
  0x53   :  { %81 = dma.hbm_to_vmem [thread:$0]  %s1851_s7, 1024, %s76_s30, [#allocation9], %s1659_s19, %s1659_s19, %s1660_s20  }
  0x54   :  { %1650 = dma.done.wait [#allocation3], 1024  }
  0x55   :  { %1651 = vsyncadd [#allocation3], 4294966272 }
  0x56   :  { %1652 = dma.done.wait [#allocation6], 9216  }
  0x57   :  { %1653 = vsyncadd [#allocation6], 4294958080 }
  0x58   :  { %1654 = dma.done.wait [#allocation9], 2048  }
  0x59   :  { %1655 = vsyncadd [#allocation9], 4294965248  ;;  %v1430_v0 = vld [vmem:[#allocation5 + $0x40] sm:$0xff]   ;;  %v1434_v4 = vld [vmem:[#allocation5 + $0x48] sm:$0xff]   ;;  %vm1666_vm0 = vmmov 0   ;;  %s1667_s11 = smov [#allocation11]  }
  0x5a   :  { %v1431_v1 = vld [vmem:[#allocation5 + $0xc0] sm:$0xff]   ;;  %1245 = vmatprep.subr.bf16.mxu0 %v1430_v0  ;;  %v1435_v5 = vld [vmem:[#allocation5 + $0xc8] sm:$0xff]   ;;  %v1438_v8 = vld [vmem:[#allocation5 + $0x50] sm:$0xff]   ;;  %s1142_s12 = sshll.u32 %s1667_s11, 4  ;;  %s1143_s12 = int_to_ptr.vmem [resolvable:$true] %s1142_s12 }
  0x5b   :  { %v1432_v2 = vld [vmem:[#allocation5] sm:$0xff]   ;;  %1267 = vmatprep.subr.bf16.mxu1 %v1431_v1  ;;  %v1436_v6 = vld [vmem:[#allocation5 + $0x8] sm:$0xff]   ;;  %v1439_v9 = vld [vmem:[#allocation5 + $0xd0] sm:$0xff]   ;;  %p1633_p13 = scmp.lt.s32.totalorder %s1143_s12, %s1143_s12 }
  0x5c   :  { %v1433_v3 = vld [vmem:[#allocation5 + $0x80] sm:$0xff]   ;;  %1246 = vmatpush3.bf16.msra.mxu0 %v1432_v2  ;;  %v1437_v7 = vld [vmem:[#allocation5 + $0x88] sm:$0xff]   ;;  %v1440_v10 = vld [vmem:[#allocation5 + $0x10] sm:$0xff]  }
  0x5d   :  { %1268 = vmatpush3.bf16.msra.mxu1 %v1433_v3  ;;  %1247 = vmatprep.subr.bf16.mxu0 %v1434_v4  ;;  %v1441_v11 = vld [vmem:[#allocation5 + $0x90] sm:$0xff]   ;;  %v1442_v12 = vld [vmem:[#allocation5 + $0x58] sm:$0xff]   ;;  %v1446_v16 = vld [vmem:[#allocation5 + $0x60] sm:$0xff]  }
  0x5e   :  { %1269 = vmatprep.subr.bf16.mxu1 %v1435_v5  ;;  %v1443_v13 = vld [vmem:[#allocation5 + $0xd8] sm:$0xff]   ;;  %v1447_v17 = vld [vmem:[#allocation5 + $0xe0] sm:$0xff]   ;;  %v1450_v20 = vld [vmem:[#allocation5 + $0x68] sm:$0xff]  }
  0x5f   :  { %v1444_v14 = vld [vmem:[#allocation5 + $0x18] sm:$0xff]   ;;  %v1448_v18 = vld [vmem:[#allocation5 + $0x20] sm:$0xff]   ;;  %v1451_v21 = vld [vmem:[#allocation5 + $0xe8] sm:$0xff]  }
  0x60   :  { %1248 = vmatpush3.bf16.msra.mxu0 %v1436_v6  ;;  %v1445_v15 = vld [vmem:[#allocation5 + $0x98] sm:$0xff]   ;;  %v1449_v19 = vld [vmem:[#allocation5 + $0xa0] sm:$0xff]   ;;  %v1452_v22 = vld [vmem:[#allocation5 + $0x28] sm:$0xff]  }
  0x61   :  { %1270 = vmatpush3.bf16.msra.mxu1 %v1437_v7  ;;  %1249 = vmatprep.subr.bf16.mxu0 %v1438_v8  ;;  %v1453_v23 = vld [vmem:[#allocation5 + $0xa8] sm:$0xff]   ;;  %v1454_v24 = vld [vmem:[#allocation5 + $0x70] sm:$0xff]   ;;  %v1458_v28 = vld [vmem:[#allocation5 + $0x78] sm:$0xff]  }
  0x62   :  { %1271 = vmatprep.subr.bf16.mxu1 %v1439_v9  ;;  %v1455_v25 = vld [vmem:[#allocation5 + $0xf0] sm:$0xff]   ;;  %v1459_v29 = vld [vmem:[#allocation5 + $0xf8] sm:$0xff]   ;;  %v101_v32 = vld [vmem:[#allocation2 + $0x8] sm:$0xff] }
  0x63   :  { %v1456_v26 = vld [vmem:[#allocation5 + $0x30] sm:$0xff]   ;;  %v1460_v30 = vld [vmem:[#allocation5 + $0x38] sm:$0xff]   ;;  %v100_v34 = vld [vmem:[#allocation2] sm:$0xff]  ;;  %v109_v35 = vpack.c.bf16 %v101_v32, %v101_v32 }
  0x64   :  { %1250 = vmatpush3.bf16.msra.mxu0 %v1440_v10  ;;  %v1457_v27 = vld [vmem:[#allocation5 + $0xb0] sm:$0xff]   ;;  %v1461_v31 = vld [vmem:[#allocation5 + $0xb8] sm:$0xff]   ;;  %v108_v37 = vpack.c.bf16 %v100_v34, %v100_v34  ;;  %v1462_v40 = vld [vmem:[#allocation5 + $0x140] sm:$0xff]  }
  0x65   :  { %1272 = vmatpush3.bf16.msra.mxu1 %v1441_v11  ;;  %1251 = vmatprep.subr.bf16.mxu0 %v1442_v12  ;;  %v103_v33 = vld [vmem:[#allocation2 + $0x18] sm:$0xff]  ;;  %v102_v38 = vld [vmem:[#allocation2 + $0x10] sm:$0xff]  ;;  %v1463_v41 = vld [vmem:[#allocation5 + $0x1c0] sm:$0xff]  }
  0x66   :  { %1273 = vmatprep.subr.bf16.mxu1 %v1443_v13  ;;  %v111_v36 = vpack.c.bf16 %v103_v33, %v103_v33  ;;  %v110_v39 = vpack.c.bf16 %v102_v38, %v102_v38  ;;  %667 = vmatprep.mubr.bf16.mxu0 %v109_v35  ;;  %v1464_v42 = vld [vmem:[#allocation5 + $0x100] sm:$0xff]   ;;  %v1466_v44 = vld [vmem:[#allocation5 + $0x148] sm:$0xff]   ;;  %v1470_v48 = vld [vmem:[#allocation5 + $0x150] sm:$0xff]  }
  0x67   :  { %v1465_v43 = vld [vmem:[#allocation5 + $0x180] sm:$0xff]   ;;  %v1467_v45 = vld [vmem:[#allocation5 + $0x1c8] sm:$0xff]   ;;  %v1471_v49 = vld [vmem:[#allocation5 + $0x1d0] sm:$0xff]  }
  0x68   :  { %1252 = vmatpush3.bf16.msra.mxu0 %v1444_v14  ;;  %707 = vmatprep.mubr.bf16.mxu1 %v111_v36  ;;  %v1468_v46 = vld [vmem:[#allocation5 + $0x108] sm:$0xff]   ;;  %v1472_v50 = vld [vmem:[#allocation5 + $0x110] sm:$0xff]   ;;  %v1474_v52 = vld [vmem:[#allocation5 + $0x158] sm:$0xff]  }
  0x69   :  { %1274 = vmatpush3.bf16.msra.mxu1 %v1445_v15  ;;  %1253 = vmatprep.subr.bf16.mxu0 %v1446_v16  ;;  %v1469_v47 = vld [vmem:[#allocation5 + $0x188] sm:$0xff]   ;;  %v1473_v51 = vld [vmem:[#allocation5 + $0x190] sm:$0xff]   ;;  %v1475_v53 = vld [vmem:[#allocation5 + $0x1d8] sm:$0xff]  }
  0x6a   :  { %1275 = vmatprep.subr.bf16.mxu1 %v1447_v17  ;;  %v1476_v54 = vld [vmem:[#allocation5 + $0x118] sm:$0xff]   ;;  %v1478_v56 = vld [vmem:[#allocation5 + $0x160] sm:$0xff]   ;;  %v1482_v60 = vld [vmem:[#allocation5 + $0x168] sm:$0xff]   ;;  %v1665_v17 = vmov 0.0  }
  0x6b   :  { %v1477_v55 = vld [vmem:[#allocation5 + $0x198] sm:$0xff]   ;;  %v1479_v57 = vld [vmem:[#allocation5 + $0x1e0] sm:$0xff]   ;;  %v1483_v61 = vld [vmem:[#allocation5 + $0x1e8] sm:$0xff]  }
  0x6c   :  { %1254 = vmatpush3.bf16.msra.mxu0 %v1448_v18  ;;  %v1480_v58 = vld [vmem:[#allocation5 + $0x120] sm:$0xff]   ;;  %v1484_v62 = vld [vmem:[#allocation5 + $0x128] sm:$0xff]   ;;  %v1486_v0 = vld [vmem:[#allocation5 + $0x170] sm:$0xff]  }
  0x6d   :  { %1276 = vmatpush3.bf16.msra.mxu1 %v1449_v19  ;;  %1255 = vmatprep.subr.bf16.mxu0 %v1450_v20  ;;  %v1481_v59 = vld [vmem:[#allocation5 + $0x1a0] sm:$0xff]   ;;  %v1485_v63 = vld [vmem:[#allocation5 + $0x1a8] sm:$0xff]   ;;  %v1487_v1 = vld [vmem:[#allocation5 + $0x1f0] sm:$0xff]  }
  0x6e   :  { %1277 = vmatprep.subr.bf16.mxu1 %v1451_v21  ;;  %v1488_v2 = vld [vmem:[#allocation5 + $0x130] sm:$0xff]   ;;  %v1490_v4 = vld [vmem:[#allocation5 + $0x178] sm:$0xff]   ;;  %v105_v8 = vld [vmem:[#allocation2 + $0x28] sm:$0xff] }
  0x6f   :  { %v1489_v3 = vld [vmem:[#allocation5 + $0x1b0] sm:$0xff]   ;;  %v1491_v5 = vld [vmem:[#allocation5 + $0x1f8] sm:$0xff]   ;;  %v113_v10 = vpack.c.bf16 %v105_v8, %v105_v8  ;;  %v104_v12 = vld [vmem:[#allocation2 + $0x20] sm:$0xff] }
  0x70   :  { %1256 = vmatpush3.bf16.msra.mxu0 %v1452_v22  ;;  %v1492_v6 = vld [vmem:[#allocation5 + $0x138] sm:$0xff]   ;;  %v106_v13 = vld [vmem:[#allocation2 + $0x30] sm:$0xff]  ;;  %v112_v14 = vpack.c.bf16 %v104_v12, %v104_v12  ;;  %v1494_v16 = vld [vmem:[#allocation7] sm:$0xff]  }
  0x71   :  { %1278 = vmatpush3.bf16.msra.mxu1 %v1453_v23  ;;  %1257 = vmatprep.subr.bf16.mxu0 %v1454_v24  ;;  %v1493_v7 = vld [vmem:[#allocation5 + $0x1b8] sm:$0xff]   ;;  %v114_v15 = vpack.c.bf16 %v106_v13, %v106_v13  ;;  %v1495_v18 = vld [vmem:[#allocation7 + $0x8] sm:$0xff]   ;;  %v1496_v19 = vld [vmem:[#allocation7 + $0x10] sm:$0xff]  }
  0x72   :  { %1279 = vmatprep.subr.bf16.mxu1 %v1455_v25  ;;  %v107_v9 = vld [vmem:[#allocation2 + $0x38] sm:$0xff]  ;;  %v1498_v21 = vld [vmem:[#allocation7 + $0x20] sm:$0xff]   ;;  %v1499_v22 = vld [vmem:[#allocation7 + $0x28] sm:$0xff]  }
  0x73   :  { %v115_v11 = vpack.c.bf16 %v107_v9, %v107_v9  ;;  %v1497_v20 = vld [vmem:[#allocation7 + $0x18] sm:$0xff]   ;;  %v1500_v23 = vld [vmem:[#allocation7 + $0x30] sm:$0xff]   ;;  %v1502_v25 = vld [vmem:[#allocation8] sm:$0xff]  }
  0x74   :  { %1258 = vmatpush3.bf16.msra.mxu0 %v1456_v26  ;;  %v1501_v24 = vld [vmem:[#allocation7 + $0x38] sm:$0xff]   ;;  %v1503_v26 = vld [vmem:[#allocation8 + $0x8] sm:$0xff]   ;;  %v1153_v33 = vld [vmem:[%s1846_s2] ss:$0 sm:$0xff] }
  0x75   :  { %1280 = vmatpush3.bf16.msra.mxu1 %v1457_v27  ;;  %1259 = vmatprep.subr.bf16.mxu0 %v1458_v28  ;;  %v1504_v27 = vld [vmem:[#allocation8 + $0x10] sm:$0xff]   ;;  %v1505_v28 = vld [vmem:[#allocation8 + $0x18] sm:$0xff]   ;;  %v1227_v12 = vld [vmem:[%s1850_s6] ss:$0 sm:$0xff]  ;;  %s1628_s6 = scalar_lea.vmem %s1143_s12, 64 }
  0x76   :  { %1281 = vmatprep.subr.bf16.mxu1 %v1459_v29  ;;  %v1506_v29 = vld [vmem:[#allocation8 + $0x20] sm:$0xff]   ;;  %p1629_p12 = scmp.ne.s32.totalorder %s1143_s12, %s1628_s6  ;;  %p1634_p0 = scmp.lt.s32.totalorder %s1628_s6, %s1628_s6 }
  0x78   :  { %1260 = vmatpush3.bf16.msra.mxu0 %v1460_v30  ;;  %v1507_v30 = vld [vmem:[#allocation8 + $0x28] sm:$0xff]   ;;  %p1635_p1 = por %p1634_p0, %p1633_p13 }
  0x79   :  { %1282 = vmatpush3.bf16.msra.mxu1 %v1461_v31  ;;  %1289 = vmatprep.subr.bf16.mxu0 %v1462_v40 }
  0x7a   :  { %1311 = vmatprep.subr.bf16.mxu1 %v1463_v41  ;;  %p1636_p2 = pnand %p1635_p1, %p1629_p12 }
  0x7b   :  { %668 = vmatmul.mubr.bf16.vlgmr.msra.gmra.mrb[0].mxu0 %v108_v37 }
  0x7c   :  { %708 = vmatmul.mubr.bf16.vlgmr.msra.gmra.mrb[0].mxu1 %v110_v39  ;;  %1290 = vmatpush3.bf16.msra.mxu0 %v1464_v42 }
  0x7d   :  { %1312 = vmatpush3.bf16.msra.mxu1 %v1465_v43  ;;  %1291 = vmatprep.subr.bf16.mxu0 %v1466_v44 }
  0x7e   :  { %1313 = vmatprep.subr.bf16.mxu1 %v1467_v45  ;;  %747 = vmatprep.mubr.bf16.mxu0 %v113_v10  ;;  %v1516_v10 = vld [vmem:[#allocation10 + $0x30] sm:$0xff]  }
  0x7f   :  { %787 = vmatprep.mubr.bf16.mxu1 %v115_v11  ;;  %v1517_v11 = vld [vmem:[#allocation10 + $0x38] sm:$0xff]  }
  0x80   :  { %1292 = vmatpush3.bf16.msra.mxu0 %v1468_v46 }
  0x81   :  { %1314 = vmatpush3.bf16.msra.mxu1 %v1469_v47  ;;  %1293 = vmatprep.subr.bf16.mxu0 %v1470_v48 }
  0x82   :  { %1315 = vmatprep.subr.bf16.mxu1 %v1471_v49 }
  0x84   :  { %1294 = vmatpush3.bf16.msra.mxu0 %v1472_v50 }
  0x85   :  { %1316 = vmatpush3.bf16.msra.mxu1 %v1473_v51  ;;  %1295 = vmatprep.subr.bf16.mxu0 %v1474_v52 }
  0x86   :  { %1317 = vmatprep.subr.bf16.mxu1 %v1475_v53 }
  0x88   :  { %1296 = vmatpush3.bf16.msra.mxu0 %v1476_v54 }
  0x89   :  { %1318 = vmatpush3.bf16.msra.mxu1 %v1477_v55  ;;  %1297 = vmatprep.subr.bf16.mxu0 %v1478_v56 }
  0x8a   :  { %1319 = vmatprep.subr.bf16.mxu1 %v1479_v57 }
  0x8c   :  { %1298 = vmatpush3.bf16.msra.mxu0 %v1480_v58  ;;  %v1508_v58 = vld [vmem:[#allocation8 + $0x30] sm:$0xff]  }
  0x8d   :  { %1320 = vmatpush3.bf16.msra.mxu1 %v1481_v59  ;;  %1299 = vmatprep.subr.bf16.mxu0 %v1482_v60  ;;  %v1509_v59 = vld [vmem:[#allocation8 + $0x38] sm:$0xff]   ;;  %v1510_v60 = vld [vmem:[#allocation10] sm:$0xff]  }
  0x8e   :  { %1321 = vmatprep.subr.bf16.mxu1 %v1483_v61  ;;  %v1511_v61 = vld [vmem:[#allocation10 + $0x8] sm:$0xff]  }
  0x90   :  { %1300 = vmatpush3.bf16.msra.mxu0 %v1484_v62  ;;  %v1512_v62 = vld [vmem:[#allocation10 + $0x10] sm:$0xff]  }
  0x91   :  { %1322 = vmatpush3.bf16.msra.mxu1 %v1485_v63  ;;  %1301 = vmatprep.subr.bf16.mxu0 %v1486_v0  ;;  %v1513_v63 = vld [vmem:[#allocation10 + $0x18] sm:$0xff]   ;;  %v1514_v0 = vld [vmem:[#allocation10 + $0x20] sm:$0xff]  }
  0x92   :  { %1323 = vmatprep.subr.bf16.mxu1 %v1487_v1  ;;  %v1515_v1 = vld [vmem:[#allocation10 + $0x28] sm:$0xff]  }
  0x94   :  { %1302 = vmatpush3.bf16.msra.mxu0 %v1488_v2  ;;  %v1218_v2 = vld [vmem:[%s1848_s4] ss:$0 sm:$0xff] }
  0x95   :  { %1324 = vmatpush3.bf16.msra.mxu1 %v1489_v3  ;;  %1303 = vmatprep.subr.bf16.mxu0 %v1490_v4 }
  0x96   :  { %1325 = vmatprep.subr.bf16.mxu1 %v1491_v5 }
  0x98   :  { %1304 = vmatpush3.bf16.msra.mxu0 %v1492_v6 }
  0x99   :  { %1326 = vmatpush3.bf16.msra.mxu1 %v1493_v7  ;;  %1360 = vmatprep.subr.bf16.mxu0 %v1665_v17 }
  0x9a   :  { %1380 = vmatprep.subr.bf16.mxu1 %v1665_v17 }
  0x9b   :  { %748 = vmatmul.mubr.bf16.vlgmr.msra.gmra.mrb[4].mxu0 %v112_v14 }
  0x9c   :  { %788 = vmatmul.mubr.bf16.vlgmr.msra.gmra.mrb[4].mxu1 %v114_v15  ;;  %1361 = vmatpush3.bf16.msra.mxu0 %v1494_v16 }
  0x9d   :  { %1362 = vmatprep.subr.bf16.mxu0 %v1665_v17  ;;  %1376 = vmatprep.mubr.msk.bf16.mxu0 %vm1666_vm0, %v1665_v17 }
  0x9e   :  { %1396 = vmatprep.mubr.msk.bf16.mxu1 %vm1666_vm0, %v1665_v17  ;;  %1381 = vmatpush3.bf16.msra.mxu1 %v1502_v25 }
  0x9f   :  { %1382 = vmatprep.subr.bf16.mxu1 %v1665_v17 }
  0xa0   :  { %1363 = vmatpush3.bf16.msra.mxu0 %v1495_v18 }
  0xa1   :  { %1364 = vmatprep.subr.bf16.mxu0 %v1665_v17 }
  0xa2   :  { %1383 = vmatpush3.bf16.msra.mxu1 %v1503_v26 }
  0xa3   :  { %1384 = vmatprep.subr.bf16.mxu1 %v1665_v17 }
  0xa4   :  { %1365 = vmatpush3.bf16.msra.mxu0 %v1496_v19 }
  0xa5   :  { %1366 = vmatprep.subr.bf16.mxu0 %v1665_v17 }
  0xa6   :  { %1385 = vmatpush3.bf16.msra.mxu1 %v1504_v27 }
  0xa7   :  { %1386 = vmatprep.subr.bf16.mxu1 %v1665_v17 }
  0xa8   :  { %1367 = vmatpush3.bf16.msra.mxu0 %v1497_v20 }
  0xa9   :  { %1368 = vmatprep.subr.bf16.mxu0 %v1665_v17 }
  0xaa   :  { %1387 = vmatpush3.bf16.msra.mxu1 %v1505_v28 }
  0xab   :  { %1388 = vmatprep.subr.bf16.mxu1 %v1665_v17 }
  0xac   :  { %1369 = vmatpush3.bf16.msra.mxu0 %v1498_v21  ;;  %v1236_v21 = vld [vmem:[%s1852_s8] ss:$0 sm:$0xff] }
  0xad   :  { %1370 = vmatprep.subr.bf16.mxu0 %v1665_v17 }
  0xae   :  { %1389 = vmatpush3.bf16.msra.mxu1 %v1506_v29 }
  0xaf   :  { %1390 = vmatprep.subr.bf16.mxu1 %v1665_v17 }
  0xb0   :  { %1371 = vmatpush3.bf16.msra.mxu0 %v1499_v22 }
  0xb1   :  { %1372 = vmatprep.subr.bf16.mxu0 %v1665_v17 }
  0xb2   :  { %1391 = vmatpush3.bf16.msra.mxu1 %v1507_v30 }
  0xb3   :  { %1392 = vmatprep.subr.bf16.mxu1 %v1665_v17 }
  0xb4   :  { %1373 = vmatpush3.bf16.msra.mxu0 %v1500_v23 }
  0xb5   :  { %1374 = vmatprep.subr.bf16.mxu0 %v1665_v17 }
  0xb6   :  { %1393 = vmatpush3.bf16.msra.mxu1 %v1508_v58 }
  0xb7   :  { %1394 = vmatprep.subr.bf16.mxu1 %v1665_v17 }
  0xb8   :  { %1375 = vmatpush3.bf16.msra.mxu0 %v1501_v24 }
  0xb9   :  { %1400 = vmatprep.subr.bf16.mxu0 %v1665_v17 }
  0xba   :  { %1395 = vmatpush3.bf16.msra.mxu1 %v1509_v59 }
 0x14e   :  { %v1261_v31 = vpop.f32.mrb[0].mxu0 }
 0x14f   :  { %v1283_v32 = vpop.f32.mrb[0].mxu1  ;;  %v1262_v34 = vpop.f32.mrb[1].mxu0 }
 0x150   :  { %v1284_v35 = vpop.f32.mrb[1].mxu1  ;;  %v1263_v36 = vadd.f32 %v1262_v34, %v1261_v31  ;;  %v1264_v38 = vpop.f32.mrb[2].mxu0 }
 0x151   :  { %v1285_v37 = vadd.f32 %v1284_v35, %v1283_v32  ;;  %v1286_v39 = vpop.f32.mrb[2].mxu1  ;;  %v1265_v40 = vpop.f32.mrb[3].mxu0 }
 0x152   :  { %v1287_v41 = vpop.f32.mrb[3].mxu1  ;;  %v670_v42 = vadd.f32 %v1263_v36, %v1153_v33 }
 0x154   :  { %v710_v43 = vadd.f32 %v1285_v37, %v670_v42 }
 0x16e   :  { %v1305_v44 = vpop.f32.mrb[4].mxu0 }
 0x16f   :  { %v1327_v45 = vpop.f32.mrb[4].mxu1  ;;  %v1306_v46 = vpop.f32.mrb[5].mxu0 }
 0x170   :  { %v1307_v47 = vadd.f32 %v1306_v46, %v1305_v44  ;;  %v1328_v48 = vpop.f32.mrb[5].mxu1  ;;  %v1308_v49 = vpop.f32.mrb[6].mxu0 }
 0x171   :  { %v1329_v50 = vadd.f32 %v1328_v48, %v1327_v45  ;;  %v1330_v51 = vpop.f32.mrb[6].mxu1  ;;  %v1309_v52 = vpop.f32.mrb[7].mxu0 }
 0x172   :  { %v750_v53 = vadd.f32 %v1307_v47, %v710_v43  ;;  %v1331_v54 = vpop.f32.mrb[7].mxu1 }
 0x174   :  { %v790_v55 = vadd.f32 %v1329_v50, %v750_v53 }
 0x176   :  { %v795_v56 = vmax.f32 %v790_v55, 0.0 }
 0x178   :  { %v796_v57 = vpack.c.bf16 %v795_v56, %v795_v56 }
 0x17a   :  { %1377 = vmatmul.mubr.bf16.vlgmr.msra.gmra.mrb[8].mxu0 %v796_v57 }
 0x17b   :  { %1416 = vmatprep.mubr.msk.bf16.mxu0 %vm1666_vm0, %v1665_v17  ;;  %1401 = vmatpush3.bf16.msra.mxu0 %v1510_v60 }
 0x17c   :  { %1402 = vmatprep.subr.bf16.mxu0 %v1665_v17 }
 0x17f   :  { %1403 = vmatpush3.bf16.msra.mxu0 %v1511_v61 }
 0x180   :  { %1404 = vmatprep.subr.bf16.mxu0 %v1665_v17 }
 0x183   :  { %1405 = vmatpush3.bf16.msra.mxu0 %v1512_v62 }
 0x184   :  { %1406 = vmatprep.subr.bf16.mxu0 %v1665_v17 }
 0x187   :  { %1407 = vmatpush3.bf16.msra.mxu0 %v1513_v63 }
 0x188   :  { %1408 = vmatprep.subr.bf16.mxu0 %v1665_v17 }
 0x18b   :  { %1409 = vmatpush3.bf16.msra.mxu0 %v1514_v0 }
 0x18c   :  { %1410 = vmatprep.subr.bf16.mxu0 %v1665_v17 }
 0x18f   :  { %1411 = vmatpush3.bf16.msra.mxu0 %v1515_v1 }
 0x190   :  { %1412 = vmatprep.subr.bf16.mxu0 %v1665_v17 }
 0x193   :  { %1413 = vmatpush3.bf16.msra.mxu0 %v1516_v10 }
 0x194   :  { %1414 = vmatprep.subr.bf16.mxu0 %v1665_v17 }
 0x197   :  { %1415 = vmatpush3.bf16.msra.mxu0 %v1517_v11 }
 0x24d   :  { %v902_v3 = vpop.f32.mrb[8].mxu0 }
 0x24e   :  { %v903_v4 = vadd.f32 %v1218_v2, %v902_v3  ;;  %v1378_v5 = vpop.f32.mrb[9].mxu0 }
 0x24f   :  { %v905_v6 = vpop.f32.mrb[10].mxu0 }
 0x250   :  { %v908_v7 = vmax.f32 %v903_v4, 0.0  ;;  %v1379_v8 = vpop.f32.mrb[11].mxu0 }
 0x252   :  { %v909_v9 = vpack.c.bf16 %v908_v7, %v908_v7 }
 0x254   :  { %1397 = vmatmul.mubr.bf16.vlgmr.msra.gmra.mrb[8].mxu1 %v909_v9 }
 0x327   :  { %v1015_v13 = vpop.f32.mrb[8].mxu1 }
 0x328   :  { %v1016_v14 = vadd.f32 %v1227_v12, %v1015_v13  ;;  %v1398_v15 = vpop.f32.mrb[9].mxu1 }
 0x329   :  { %v1018_v16 = vpop.f32.mrb[10].mxu1 }
 0x32a   :  { %v1021_v18 = vmax.f32 %v1016_v14, 0.0  ;;  %v1399_v19 = vpop.f32.mrb[11].mxu1 }
 0x32c   :  { %v1022_v20 = vpack.c.bf16 %v1021_v18, %v1021_v18 }
 0x32e   :  { %1417 = vmatmul.mubr.bf16.vlgmr.msra.gmra.mrb[12].mxu0 %v1022_v20 }
 0x401   :  { %v1128_v22 = vpop.f32.mrb[12].mxu0 }
 0x402   :  { %v1129_v17 = vadd.f32 %v1236_v21, %v1128_v22  ;;  %v1418_v23 = vpop.f32.mrb[13].mxu0 }
 0x403   :  { %v1131_v24 = vpop.f32.mrb[14].mxu0 }
 0x404   :  { %v1134_v25 = vpack.c.bf16 %v1129_v17, %v1129_v17  ;;  %v1419_v26 = vpop.f32.mrb[15].mxu0 }
 0x406   :  { %1135 = vst [vmem:[#allocation11] sm:$0xf] %v1134_v25 }
 0x407   :  { %1639 = shalt.err (!%p1636_p2)
}
 0x408   :  { %s1640_s8 = scalar_lea.hbm %s1853_s9, 64 }
 0x409   :  { %p1641_p3 = scmp.ne.s32.totalorder %s1853_s9, %s1640_s8  ;;  %p1644_p4 = scmp.lt.u32.totalorder %s1640_s8, %s1853_s9 }
 0x40b   :  { %p1646_p5 = pnand %p1644_p4, %p1641_p3 }
 0x40d   :  { %1649 = shalt.err (!%p1646_p5)
}
 0x40e   :  { %1145 = dma.vmem_to_hbm [thread:$0]  %s1143_s12, 64, %s1853_s9, [#allocation4]  }
 0x40f   :  { %1656 = dma.done.wait [#allocation4], 64  }
 0x410   :  { %1657 = vsyncadd [#allocation4], 4294967232 }
 0x411   :  { %1149 = vsyncpa [#allocation3], 1 }
 0x412   :  { %1150 = vsyncpa [#allocation6], 1 }
 0x413   :  { %1151 = vsyncpa [#allocation9], 1 }
 0x414   :  { %1152 = vsyncpa [#allocation4], 1 }

</bundles_post_ra>
